<compile_context>
chip_gen: v7x
topology: tpu7x:2x2x1
jax: 0.10.0
libtpu: 0.0.40
codegen_flags: <defaults>
</compile_context>

<pallas_src>
import math

import jax
import jax.numpy as jnp
from jax.experimental import pallas as pl
from jax.experimental.pallas import tpu as pltpu


def _sphere_weight(h, w, dtype=jnp.float32):
    """Replicates the PyTorch __init__ weight: shape (h, w), constant per row."""
    theta_range = jnp.linspace(0.0, math.pi, h + 1)
    dtheta = math.pi / h
    dphi = 2.0 * math.pi / w
    row = dphi * (jnp.sin(theta_range[:-1]) + jnp.sin(theta_range[1:])) / 2.0 * dtheta
    return jnp.broadcast_to(row[:, None], (h, w)).astype(dtype)


def _sphere_mse_kernel(out_ref, tgt_ref, w_ref, o_ref, acc_ref):
    j = pl.program_id(1)  # reduction axis (last grid dim)

    @pl.when(j == 0)
    def _():
        acc_ref[...] = jnp.zeros_like(acc_ref)

    d = out_ref[...].astype(jnp.float32) - tgt_ref[...].astype(jnp.float32)
    # (TB, HW) * (1, HW): pure VALU work, lane axis stays dense.
    acc_ref[...] += d * d * w_ref[...]

    @pl.when(j == pl.num_programs(1) - 1)
    def _():
        # Single row-axis reduce per core; the store stays lane-dense (1,1,HW).
        o_ref[...] = jnp.sum(acc_ref[...], axis=0, keepdims=True)[None]


def _choose_tb(rows, hw, itemsize, num_partials):
    """Rows per block: multiple of 8, ~1 MiB input blocks, no larger than needed."""
    target_bytes = 1 << 20
    tb = max(8, (target_bytes // max(hw * itemsize, 1)) // 8 * 8)
    per_core = -(-rows // num_partials)           # ceil(rows / num_partials)
    per_core = ((per_core + 7) // 8) * 8          # round up to multiple of 8
    return max(8, min(tb, per_core))


def sphere_mse(out, target, weight):
    """out, target: (B, C, H, W); weight: (H, W). Returns scalar f32."""
    b, c, h, w = out.shape
    hw = h * w
    rows = b * c
    itemsize = jnp.dtype(out.dtype).itemsize

    num_partials = 2  # one partial sum per TensorCore on v7x; harmless on 1-TC chips
    tb = _choose_tb(rows, hw, itemsize, num_partials)
    nj = -(-rows // (num_partials * tb))          # reduction steps per core
    padded_rows = num_partials * nj * tb

    out_flat = out.reshape(rows, hw)
    tgt_flat = target.reshape(rows, hw)
    if padded_rows != rows:
        pad = padded_rows - rows
        out_flat = jnp.pad(out_flat, ((0, pad), (0, 0)))
        tgt_flat = jnp.pad(tgt_flat, ((0, pad), (0, 0)))
    w_flat = weight.reshape(1, hw).astype(jnp.float32)

    partials = pl.pallas_call(
        _sphere_mse_kernel,
        out_shape=jax.ShapeDtypeStruct((num_partials, 1, hw), jnp.float32),
        grid_spec=pltpu.PrefetchScalarGridSpec(
            num_scalar_prefetch=0,
            grid=(num_partials, nj),
            in_specs=[
                pl.BlockSpec((tb, hw), lambda i, j: (i * nj + j, 0)),
                pl.BlockSpec((tb, hw), lambda i, j: (i * nj + j, 0)),
                pl.BlockSpec((1, hw), lambda i, j: (0, 0)),
            ],
            out_specs=pl.BlockSpec((1, 1, hw), lambda i, j: (i, 0, 0)),
            scratch_shapes=[pltpu.VMEM((tb, hw), jnp.float32)],
        ),
        compiler_params=pltpu.CompilerParams(
            dimension_semantics=("parallel", "arbitrary"),
        ),
        cost_estimate=pl.CostEstimate(
            flops=4 * rows * hw,
            transcendentals=0,
            bytes_accessed=2 * rows * hw * itemsize + num_partials * hw * 4,
        ),
    )(out_flat, tgt_flat, w_flat)

    return jnp.sum(partials) / jnp.float32(b)


if __name__ == "__main__":
    B, C, H, W = 2, 4, 16, 16

    key = jax.random.PRNGKey(0)
    k1, k2 = jax.random.split(key)
    out = jax.random.normal(k1, (B, C, H, W), dtype=jnp.float32)
    target = jax.random.normal(k2, (B, C, H, W), dtype=jnp.float32)

    weight = _sphere_weight(H, W)

    result = jax.block_until_ready(sphere_mse(out, target, weight))

    # Pure-JAX reference check of the exact PyTorch semantics.
    ref = jnp.sum((out - target) ** 2 * weight[None, None, :, :]) / B
    assert jnp.allclose(result, ref, rtol=1e-5, atol=1e-5), (result, ref)

    print("KERNEL_OK")
</pallas_src>

<mosaic_0001>
module attributes {stable_mosaic.version = 11 : i64} {
  func.func @_sphere_mse_kernel(%arg0: i32, %arg1: i32, %arg2: memref<8x256xf32, #tpu.memory_space<vmem>>, %arg3: memref<8x256xf32, #tpu.memory_space<vmem>>, %arg4: memref<1x256xf32, #tpu.memory_space<vmem>>, %arg5: memref<1x1x256xf32, #tpu.memory_space<vmem>>, %arg6: memref<8x256xf32, #tpu.memory_space<vmem>>) attributes {dimension_semantics = [#tpu.dimension_semantics<parallel>, #tpu.dimension_semantics<arbitrary>], iteration_bounds = array<i64: 2, 1>, scalar_prefetch = 0 : i64, scratch_operands = 1 : i64, tpu.core_type = #tpu.core_type<tc>, window_params = [{transform_indices = @transform_0, window_bounds = array<i64: 8, 256>}, {transform_indices = @transform_1, window_bounds = array<i64: 8, 256>}, {pipeline_mode = #tpu.pipeline_mode<synchronous>, transform_indices = @transform_2, window_bounds = array<i64: 1, 256>}, {transform_indices = @transform_3, window_bounds = array<i64: 1, 1, 256>}]} {
    %c0_i32 = arith.constant 0 : i32
    %0 = arith.cmpi eq, %arg1, %c0_i32 : i32
    %1 = arith.extui %0 : i1 to i32
    %c0_i32_0 = arith.constant 0 : i32
    %2 = arith.cmpi ne, %1, %c0_i32_0 : i32
    scf.if %2 {
      %cst = arith.constant 0.000000e+00 : f32
      %16 = vector.broadcast %cst : f32 to vector<8x256xf32>
      %c0_12 = arith.constant 0 : index
      %c0_13 = arith.constant 0 : index
      %17 = vector.load %arg6[%c0_12, %c0_13] : memref<8x256xf32, #tpu.memory_space<vmem>>, vector<8x256xf32>
      tpu.vector_store %arg6[%c0_12, %c0_13], %16 {strides = array<i32>} : memref<8x256xf32, #tpu.memory_space<vmem>>, vector<8x256xf32>,
    } else {
    }
    %c0 = arith.constant 0 : index
    %c0_1 = arith.constant 0 : index
    %3 = vector.load %arg2[%c0, %c0_1] : memref<8x256xf32, #tpu.memory_space<vmem>>, vector<8x256xf32>
    %c0_2 = arith.constant 0 : index
    %c0_3 = arith.constant 0 : index
    %4 = vector.load %arg3[%c0_2, %c0_3] : memref<8x256xf32, #tpu.memory_space<vmem>>, vector<8x256xf32>
    %5 = arith.subf %3, %4 : vector<8x256xf32>
    %c0_4 = arith.constant 0 : index
    %c0_5 = arith.constant 0 : index
    %6 = vector.load %arg6[%c0_4, %c0_5] : memref<8x256xf32, #tpu.memory_space<vmem>>, vector<8x256xf32>
    %7 = arith.mulf %5, %5 : vector<8x256xf32>
    %c0_6 = arith.constant 0 : index
    %c0_7 = arith.constant 0 : index
    %8 = vector.load %arg4[%c0_6, %c0_7] : memref<1x256xf32, #tpu.memory_space<vmem>>, vector<1x256xf32>
    %9 = vector.broadcast %8 : vector<1x256xf32> to vector<8x256xf32>
    %10 = arith.mulf %7, %9 : vector<8x256xf32>
    %11 = arith.addf %6, %10 : vector<8x256xf32>
    %c0_8 = arith.constant 0 : index
    %c0_9 = arith.constant 0 : index
    %12 = vector.load %arg6[%c0_8, %c0_9] : memref<8x256xf32, #tpu.memory_space<vmem>>, vector<8x256xf32>
    tpu.vector_store %arg6[%c0_8, %c0_9], %11 {strides = array<i32>} : memref<8x256xf32, #tpu.memory_space<vmem>>, vector<8x256xf32>,
    %c0_i32_10 = arith.constant 0 : i32
    %13 = arith.cmpi eq, %arg1, %c0_i32_10 : i32
    %14 = arith.extui %13 : i1 to i32
    %c0_i32_11 = arith.constant 0 : i32
    %15 = arith.cmpi ne, %14, %c0_i32_11 : i32
    scf.if %15 {
      %c0_12 = arith.constant 0 : index
      %c0_13 = arith.constant 0 : index
      %16 = vector.load %arg6[%c0_12, %c0_13] : memref<8x256xf32, #tpu.memory_space<vmem>>, vector<8x256xf32>
      %cst = arith.constant dense<0.000000e+00> : vector<256xf32>
      %17 = vector.multi_reduction <add>, %16, %cst [0] : vector<8x256xf32> to vector<256xf32>
      %18 = vector.shape_cast %17 : vector<256xf32> to vector<1x256xf32>
      %19 = vector.shape_cast %18 : vector<1x256xf32> to vector<1x1x256xf32>
      %c0_14 = arith.constant 0 : index
      %c0_15 = arith.constant 0 : index
      %c0_16 = arith.constant 0 : index
      %20 = vector.load %arg5[%c0_14, %c0_15, %c0_16] : memref<1x1x256xf32, #tpu.memory_space<vmem>>, vector<1x1x256xf32>
      tpu.vector_store %arg5[%c0_14, %c0_15, %c0_16], %19 {strides = array<i32>} : memref<1x1x256xf32, #tpu.memory_space<vmem>>, vector<1x1x256xf32>,
    } else {
    }
    return
  }
  func.func @transform_0(%arg0: i32, %arg1: i32) -> (i32, i32) {
    %c1_i32 = arith.constant 1 : i32
    %0 = arith.muli %arg0, %c1_i32 : i32
    %1 = arith.addi %0, %arg1 : i32
    %c0_i32 = arith.constant 0 : i32
    %c0_i32_0 = arith.constant 0 : i32
    return %1, %c0_i32 : i32, i32
  }
  func.func @transform_1(%arg0: i32, %arg1: i32) -> (i32, i32) {
    %c1_i32 = arith.constant 1 : i32
    %0 = arith.muli %arg0, %c1_i32 : i32
    %1 = arith.addi %0, %arg1 : i32
    %c0_i32 = arith.constant 0 : i32
    %c0_i32_0 = arith.constant 0 : i32
    return %1, %c0_i32 : i32, i32
  }
  func.func @transform_2(%arg0: i32, %arg1: i32) -> (i32, i32) {
    %c0_i32 = arith.constant 0 : i32
    %c0_i32_0 = arith.constant 0 : i32
    %c0_i32_1 = arith.constant 0 : i32
    return %c0_i32, %c0_i32_0 : i32, i32
  }
  func.func @transform_3(%arg0: i32, %arg1: i32) -> (i32, i32, i32) {
    %c0_i32 = arith.constant 0 : i32
    %c0_i32_0 = arith.constant 0 : i32
    %c0_i32_1 = arith.constant 0 : i32
    return %arg0, %c0_i32, %c0_i32_0 : i32, i32, i32
  }
}

</mosaic_0001>

<bundles_post_ra>
// kernel: tpu_custom_call.1
= control target key start
LH: loop header
LB: loop body
LE: loop exit
PB: predicated region body
PF: predicated region fallthrough
CT: control target
= control target key end

     0   :  { %8 = vsyncpa [#allocation4], 0  ;;  %s923_s0 = inlined_call_operand.hbm [shape: f32[16,256], index: 0, kind: input, shape index: {}]   ;;  %s924_s1 = inlined_call_operand.hbm [shape: f32[16,256], index: 1, kind: input, shape index: {}]   ;;  %s925_s2 = inlined_call_operand.vmem [shape: f32[1,256], index: 2, kind: input, shape index: {}]   ;;  %s926_s3 = inlined_call_operand.hbm [shape: f32[2,1,256], index: 3, kind: output, shape index: {}]  }
   0x1   :  { %10 = vsyncpa [#allocation4 + $0x1], 0 }
   0x2   :  { %11 = vsyncpa [#allocation7], 0 }
   0x3   :  { %13 = vsyncpa [#allocation7 + $0x1], 0 }
   0x4   :  { %14 = vsyncpa [#allocation5], 0 }
   0x5   :  { %16 = vsyncpa [#allocation5 + $0x1], 0  ;;  %s699_s12 = smov 0   ;;  %s701_s13 = smov 0  }
   0x6   :  { %s703_s14 = smov 0   ;;  %s705_s15 = smov 0  }
   0x7   :  { %s707_s16 = smov 0   ;;  %s709_s17 = smov 0  }
   0x8 LB: > { %s437_s18 = sadd.s32 4294967295, %s673_s17   ;;  %s438_s19 = sadd.s32 4294967294, %s673_s17   ;;  %s673_s17 = sphi %s709_s17, %s22_s17   ;;  %s669_s16 = sphi %s707_s16, %s946_s16   ;;  %s665_s15 = sphi %s705_s15, %s945_s15   ;;  %s661_s14 = sphi %s703_s14, %s944_s14   ;;  %s657_s13 = sphi %s701_s13, %s943_s13   ;;  %s653_s12 = sphi %s699_s12, %s942_s12  }
   0x9   : > { %s34_s20 = sadd.s32 1, %s669_s16  ;;  %s43_s21 = sadd.s32 1, %s661_s14 }
   0xa   : > { %p36_p0 = scmp.ge.s32.totalorder %s34_s20, 2  ;;  %p50_p1 = scmp.ne.s32.totalorder %s661_s14, %s657_s13 }
   0xb   : > { %p51_p2 = scmp.eq.s32.totalorder %s673_s17, 0  ;;  %p56_p3 = scmp.ne.s32.totalorder %s657_s13, %s653_s12 }
   0xc   : > { %s948_s20 = smov (%p36_p0, %s34_s20), 0  ;;  %p57_p5 = scmp.eq.s32.totalorder %s437_s18, 0 }
   0xd   : > { %p740_p4 = por %p51_p2, %p50_p1  ;;  %s40_s23 = ssub.s32 %s669_s16, %s948_s20 }
   0xe   : > { %p129_p6 = scmp.eq.s32.totalorder %s437_s18, 1  ;;  %p41_p7 = scmp.eq.s32.totalorder %s40_s23, 0 }
   0xf   : > { %p746_p8 = por %p57_p5, %p56_p3  ;;  %p135_p10 = scmp.eq.s32.totalorder %s438_s19, 1 }
  0x10   : > { %p750_p9 = por %p129_p6, %p50_p1  ;;  %p476_p13 = scmp.lt.s32.totalorder %s673_s17, 2 }
  0x11   : > { %s930_s24 = scalar_select %p746_p8, 1, 0 }
  0x12   : > { %s931_s25 = scalar_select %p750_p9, 1, 0 }
  0x13   : > { %s755_s26 = scalar_select %p41_p7, %s661_s14, %s43_s21  }
  0x14   : > { %p757_p11 = por %p135_p10, %p56_p3  ;;  %s764_s28 = sand.u32 1, %s661_s14  }
  0x15   : > { %s441_s29 = sshll.u32 %s764_s28, 4  ;;  %s456_s30 = sshll.u32 %s669_s16, 8 }
  0x16   : > { %s932_s27 = scalar_select %p757_p11, 1, 0 }
  0x17   : > { %s773_s6 = scalar_lea.hbm %s923_s0, %s456_s30  ;;  %s162_s7 = scalar_lea.vmem [#allocation3], %s441_s29 }
  0x18   : > { %s171_s8 = sshll.u32 %s162_s7, 4  ;;  %p781_p0 = pnand %p476_p13, %p740_p4  ;;  %s777_s8 = int_to_ptr.vmem [resolvable:$true] %s171_s8 }
  0x19   : > { %s159_s10 = scalar_lea.sflag [#allocation4], %s764_s28  ;;  %s527_s11 = scalar_lea.hbm %s773_s6, 256 }
  0x1a   : > { %p528_p3 = scmp.ne.s32.totalorder %s773_s6, %s527_s11  ;;  %p529_p5 = pneg %p781_p0 }
  0x1b   : > { %s532_s21 = scalar_lea.hbm %s923_s0, 512  ;;  %p533_p4 = scmp.lt.u32.totalorder %s773_s6, %s923_s0 }
  0x1c   : > { %p530_p6 = pnand %p529_p5, %p528_p3  ;;  %p534_p10 = scmp.lt.u32.totalorder %s532_s21, %s527_s11 }
  0x1d   : > { %p536_p12 = scmp.lt.u32.totalorder %s527_s11, %s773_s6 }
  0x1e   : > { %p531_p7 = pneg %p530_p6  ;;  %p535_p13 = por %p534_p10, %p533_p4 }
  0x20   : > { %p537_p1 = por %p536_p12, %p535_p13 }
  0x22   : > { %p538_p2 = pnand %p537_p1, %p531_p7 }
  0x24   : > { %541 = shalt.err (!%p538_p2)
}
  0x25   : > { %s542_s4 = scalar_lea.vmem %s777_s8, 256  ;;  %s675_s5 = smov [#allocation3]  }
  0x26   : > { %p543_p3 = scmp.ne.s32.totalorder %s777_s8, %s542_s4  ;;  %s547_s7 = sshll.u32 %s675_s5, 4  ;;  %s548_s7 = int_to_ptr.vmem [resolvable:$false] %s547_s7 }
  0x27   : > { %s549_s18 = scalar_lea.vmem %s548_s7, 512  ;;  %p550_p9 = scmp.lt.s32.totalorder %s777_s8, %s548_s7 }
  0x28   : > { %p545_p6 = pnand %p543_p3, %p529_p5  ;;  %p551_p4 = scmp.lt.s32.totalorder %s549_s18, %s542_s4 }
  0x2a   : > { %p546_p11 = pneg %p545_p6  ;;  %p552_p10 = por %p551_p4, %p550_p9 }
  0x2c   : > { %p553_p12 = pnand %p552_p10, %p546_p11 }
  0x2e   : > { %556 = shalt.err (!%p553_p12)
}
  0x2f   : > { %468 = dma.hbm_to_vmem [thread:$0]  (!%p781_p0), %s773_s6, 256, %s777_s8, %s159_s10  }
  0x30   : > { %p934_p1 = scmp.lt.s32.totalorder %s673_s17, 3  ;;  %p935_p2 = scmp.ge.s32.totalorder %s673_s17, 1 }
  0x31   : > { %s826_s22 = scalar_lea.hbm %s924_s1, %s456_s30  ;;  %s182_s23 = scalar_lea.vmem [#allocation6], %s441_s29 }
  0x32   : > { %p817_p7 = pnand %p935_p2, %p934_p1  ;;  %s191_s4 = sshll.u32 %s182_s23, 4  ;;  %s192_s4 = int_to_ptr.vmem [resolvable:$true] %s191_s4 }
  0x33   : > { %s179_s6 = scalar_lea.sflag [#allocation7], %s764_s28  ;;  %s557_s8 = scalar_lea.hbm %s826_s22, 256 }
  0x34   : > { %s936_s11 = scalar_select %p817_p7, 1, 0 }
  0x35   : > { %p558_p9 = scmp.ne.s32.totalorder %s826_s22, %s557_s8  ;;  %s562_s30 = scalar_lea.hbm %s924_s1, 512 }
  0x36   : > { %p563_p3 = scmp.lt.u32.totalorder %s826_s22, %s924_s1  ;;  %p564_p6 = scmp.lt.u32.totalorder %s562_s30, %s557_s8 }
  0x37   : > { %p560_p11 = pnand %p558_p9, %p529_p5  ;;  %p566_p10 = scmp.lt.u32.totalorder %s557_s8, %s826_s22 }
  0x38   : > { %p565_p4 = por %p564_p6, %p563_p3 }
  0x39   : > { %p561_p13 = pneg %p560_p11 }
  0x3a   : > { %p567_p12 = por %p566_p10, %p565_p4 }
  0x3c   : > { %p568_p1 = pnand %p567_p12, %p561_p13 }
  0x3e   : > { %571 = shalt.err (!%p568_p1)
}
  0x3f   : > { %s572_s28 = scalar_lea.vmem %s192_s4, 256  ;;  %s676_s29 = smov [#allocation6]  }
  0x40   : > { %p573_p2 = scmp.ne.s32.totalorder %s192_s4, %s572_s28  ;;  %s577_s19 = sshll.u32 %s676_s29, 4  ;;  %s578_s19 = int_to_ptr.vmem [resolvable:$false] %s577_s19 }
  0x41   : > { %s579_s21 = scalar_lea.vmem %s578_s19, 512  ;;  %p580_p8 = scmp.lt.s32.totalorder %s192_s4, %s578_s19 }
  0x42   : > { %p575_p9 = pnand %p573_p2, %p529_p5  ;;  %p581_p7 = scmp.lt.s32.totalorder %s579_s21, %s572_s28 }
  0x44   : > { %p576_p11 = pneg %p575_p9  ;;  %p582_p3 = por %p581_p7, %p580_p8 }
  0x46   : > { %p583_p6 = pnand %p582_p3, %p576_p11 }
  0x48   : > { %586 = shalt.err (!%p583_p6)
}
  0x49   : > { %471 = dma.hbm_to_vmem [thread:$0]  (!%p781_p0), %s826_s22, 256, %s192_s4, %s179_s6  }
  0x4a   : > { %p937_p13 = scmp.ne.s32.totalorder %s936_s11, 0 }
  0x4b   : > { %s853_s23 = sand.u32 (!%p937_p13), 1, %s657_s13   ;;  %p938_p5 = scmp.ne.s32.totalorder (!%p937_p13), %s930_s24, 0 }
  0x4c   : > { %200 = sbr.rel (%p937_p13) target bundleno = 128 (0x80), region = 32  ;;  %s448_s8 = sshll.u32 (!%p937_p13), %s853_s23, 4 }
  0x4d   : > { %s203_s10 = scalar_lea.sflag (!%p937_p13), [#allocation4], %s853_s23  ;;  %s206_s5 = scalar_lea.vmem (!%p937_p13), [#allocation3], %s448_s8 }
  0x53   : > { %640 = dma.done.wait (%p938_p5), %s203_s10, 256  }
  0x54   : > { %642 = vsyncadd (%p938_p5), %s203_s10, 4294967040  ;;  %s212_s9 = scalar_lea.sflag [#allocation7], %s853_s23  ;;  %s215_s22 = scalar_lea.vmem [#allocation6], %s448_s8 }
  0x55   : > { %644 = dma.done.wait (%p938_p5), %s212_s9, 256  }
  0x56   : > { %646 = vsyncadd (%p938_p5), %s212_s9, 4294967040  ;;  %v263_v0 = vlaneseq  ;;  %v251_v4 = vld [vmem:[%s206_s5] sm:$0xff]  ;;  %v252_v5 = vld [vmem:[%s206_s5 + $0x8] sm:$0xff]  ;;  %v677_v21 = vmov 1966171168   ;;  %s450_s24 = sshll.u32 %s853_s23, 1 }
  0x57   : > { %v253_v6 = vld [vmem:[%s215_s22] sm:$0xff]  ;;  %v254_v7 = vld [vmem:[%s215_s22 + $0x8] sm:$0xff]  ;;  %v300_v22 = vunpack.c.l.s4 %v677_v21  ;;  %s242_s6 = scalar_lea.vmem [#allocation8], %s450_s24  ;;  %s458_s7 = sshll.u32 %s665_s15, 5 }
  0x58   : > { %v264_v1 = vshrl.u32 %v263_v0, 7  ;;  %v255_v8 = vsub.f32 %v251_v4, %v253_v6  ;;  %v261_v9 = vld [vmem:[%s925_s2] sm:$0x3]  ;;  %v256_v10 = vsub.f32 %v252_v5, %v254_v7  ;;  %s334_s30 = sshll.u32 %s242_s6, 4  ;;  %vm316_vm0 = vcmp.lt.s32.totalorder %v263_v0, 256  ;;  %s876_s29 = scalar_lea.hbm %s926_s3, %s458_s7  ;;  %s871_s30 = int_to_ptr.vmem [resolvable:$true] %s334_s30 }
  0x59   : > { %v301_v27 = vunpack.c.0.s8 %v300_v22  ;;  %s320_s19 = scalar_lea.sflag [#allocation5], %s853_s23  ;;  %s587_s21 = scalar_lea.vmem %s871_s30, 32 }
  0x5a   : > { %v265_v2 = vsub.s32 0, %v264_v1  ;;  %v269_v3 = vsub.s32 1, %v264_v1  ;;  %v259_v13 = vmul.f32 %v255_v8, %v255_v8  ;;  %v260_v14 = vmul.f32 %v256_v10, %v256_v10  ;;  %p588_p8 = scmp.ne.s32.totalorder %s871_s30, %s587_s21  ;;  %p939_p0 = scmp.ne.s32.totalorder %s931_s25, 0 }
  0x5b   : > { %v304_v32 = vsub.s32 %v301_v27, %v264_v1  ;;  %s678_s15 = smov [#allocation8]  }
  0x5c   : > { %v266_v11 = vrot.slane %v261_v9, %v265_v2  ;;  %v270_v12 = vrot.slane %v261_v9, %v269_v3  ;;  %p589_p7 = pnand %p588_p8, %p939_p0  ;;  %s591_s8 = sshll.u32 %s678_s15, 4  ;;  %s592_s8 = int_to_ptr.vmem [resolvable:$false] %s591_s8 }
  0x5d   : > { %s593_s10 = scalar_lea.vmem %s592_s8, 64  ;;  %p594_p10 = scmp.lt.s32.totalorder %s871_s30, %s592_s8 }
  0x5e   : > { %v273_v15 = vmul.f32 %v266_v11, %v259_v13  ;;  %v274_v16 = vmul.f32 %v270_v12, %v260_v14  ;;  %p590_p4 = pneg %p589_p7  ;;  %p595_p12 = scmp.lt.s32.totalorder %s593_s10, %s587_s21 }
  0x60   : > { %v284_v17 = vrot.slane %v273_v15, 4  ;;  %v290_v18 = vrot.slane %v274_v16, 4  ;;  %p596_p1 = por %p595_p12, %p594_p10 }
  0x62   : > { %v285_v19 = vadd.f32 %v284_v17, %v273_v15  ;;  %v291_v20 = vadd.f32 %v290_v18, %v274_v16  ;;  %p597_p2 = pnand %p596_p1, %p590_p4 }
  0x64   : > { %v286_v23 = vrot.slane %v285_v19, 2  ;;  %v292_v24 = vrot.slane %v291_v20, 2 }
  0x66   : > { %v287_v25 = vadd.f32 %v286_v23, %v285_v19  ;;  %v293_v26 = vadd.f32 %v292_v24, %v291_v20 }
  0x68   : > { %v288_v28 = vrot.slane %v287_v25, 1  ;;  %v294_v29 = vrot.slane %v293_v26, 1 }
  0x6a   : > { %v289_v30 = vadd.f32 %v288_v28, %v287_v25  ;;  %v295_v31 = vadd.f32 %v294_v29, %v293_v26 }
  0x6c   : > { %v298_v33 = vcombine.low %v289_v30, %v295_v31 }
  0x6e   : > { %v305_v34 = vrot.slane %v298_v33, %v304_v32 }
  0x70   : > { %v312_v35 = vrot.slane %v305_v34, %v304_v32 }
  0x72   : > { %318 = vst.msk [vmem:[%s242_s6] sm:$0x3] %vm316_vm0, %v312_v35 }
  0x73   : > { %600 = shalt.err (!%p597_p2)
}
  0x74   : > { %s601_s23 = scalar_lea.hbm %s876_s29, 32  ;;  %s605_s22 = scalar_lea.hbm %s926_s3, 64 }
  0x75   : > { %p602_p9 = scmp.ne.s32.totalorder %s876_s29, %s601_s23  ;;  %p606_p6 = scmp.lt.u32.totalorder %s876_s29, %s926_s3 }
  0x76   : > { %p607_p13 = scmp.lt.u32.totalorder %s605_s22, %s601_s23  ;;  %p609_p8 = scmp.lt.u32.totalorder %s601_s23, %s876_s29 }
  0x77   : > { %p603_p11 = pnand %p602_p9, %p939_p0 }
  0x78   : > { %p608_p5 = por %p607_p13, %p606_p6 }
  0x79   : > { %p604_p3 = pneg %p603_p11 }
  0x7a   : > { %p610_p7 = por %p609_p8, %p608_p5 }
  0x7c   : > { %p611_p4 = pnand %p610_p7, %p604_p3 }
  0x7e   : > { %614 = shalt.err (!%p611_p4)
}
  0x7f   : > { %463 = dma.vmem_to_hbm [thread:$0]  (%p939_p0), %s871_s30, 32, %s876_s29, %s320_s19  }
  0x80 PF: > { %s346_s24 = sand.u32 1, %s653_s12   ;;  %p940_p10 = scmp.ne.s32.totalorder %s932_s27, 0 }
  0x81   : > { %p941_p12 = scmp.ge.s32.totalorder %s673_s17, 2  ;;  %s347_s6 = scalar_lea.sflag [#allocation5], %s346_s24 }
  0x83   : > { %p473_p1 = pnand %p941_p12, %p940_p10 }
  0x85   : > { %648 = dma.done.wait (!%p473_p1), %s347_s6, 32  }
  0x86   : > { %650 = vsyncadd (!%p473_p1), %s347_s6, 4294967264  ;;  %s22_s17 = sadd.s32 1, %s673_s17   ;;  %s942_s12 = smov %s657_s13 }
  0x87   : > { %p19_p2 = scmp.ge.s32.totalorder %s22_s17, 4   ;;  %s943_s13 = smov %s661_s14 }
  0x88   : > { %s944_s14 = smov %s755_s26  ;;  %s945_s15 = smov %s669_s16 }
  0x89   : > { %s946_s16 = smov %s948_s20  ;;  %21 = sbr.rel (!%p19_p2) target bundleno = 8 (0x8), region = 98 }
  0x90   :  { %352 = vsyncpa [#allocation4], 1 }
  0x91   :  { %354 = vsyncpa [#allocation4 + $0x1], 1 }
  0x92   :  { %355 = vsyncpa [#allocation7], 1 }
  0x93   :  { %357 = vsyncpa [#allocation7 + $0x1], 1 }
  0x94   :  { %358 = vsyncpa [#allocation5], 1 }
  0x95   :  { %360 = vsyncpa [#allocation5 + $0x1], 1 }

</bundles_post_ra>
